<compile_context>
chip_gen: v5e
topology: v5e:2x2
jax: 0.10.0
libtpu: 0.0.40
codegen_flags: <defaults>
</compile_context>

<pallas_src>
import jax
import jax.numpy as jnp
from jax import lax
from jax.experimental import pallas as pl
from jax.experimental.pallas import tpu as pltpu


def _round_up(v, m):
    return (v + m - 1) // m * m


def _spectral_mix_kernel(x_ref, w_ref, o_ref):
    """One block of Fourier modes (modes on the 128-lane axis).

    x_ref : (2, B,  Ci, m_blk)   [0]=Re(x_ft), [1]=Im(x_ft)
    w_ref : (2, Ci, Co, m_blk)   [0]=Re(w),    [1]=Im(w)
    o_ref : (2, B,  Co, m_blk)   [0]=Re(out),  [1]=Im(out)
    """
    xr = x_ref[0]                      # (B, Ci, m)
    xi = x_ref[1]
    wr = w_ref[0]                      # (Ci, Co, m)
    wi = w_ref[1]

    B, Ci, m = xr.shape
    Co = wr.shape[1]

    acc_re = jnp.zeros((B, Co, m), jnp.float32)
    acc_im = jnp.zeros((B, Co, m), jnp.float32)

    # Per-input-channel complex multiply-accumulate on the VPU.  Ci is a small
    # static trace-time constant, so this unrolls into Ci * 8 full-lane FMAs
    # per (B, Co) vreg row; intermediates never exceed (B, Co, m_blk).
    for i in range(Ci):
        xr_i = xr[:, i, :][:, None, :]         # (B, 1, m)
        xi_i = xi[:, i, :][:, None, :]
        wr_i = wr[i][None, :, :]               # (1, Co, m)
        wi_i = wi[i][None, :, :]
        acc_re = acc_re + xr_i * wr_i - xi_i * wi_i
        acc_im = acc_im + xr_i * wi_i + xi_i * wr_i

    o_ref[0] = acc_re
    o_ref[1] = acc_im


def _vmem_capacity_bytes():
    try:
        return int(pltpu.get_tpu_info().vmem_capacity_bytes)
    except Exception:
        return 64 * 1024 * 1024            # conservative (v7x per-TC) default


def _pick_mode_block(batch, ci, co, modes):
    """Largest 128-multiple mode block whose pipelined working set fits VMEM."""
    # f32 bytes per mode column.  The mode axis is the lane (last) dim, so the
    # only tile padding is the sublane round-up of the second-to-last dims.
    per_mode = 4 * (
        2 * 2 * batch * _round_up(ci, 8)      # x block, double-buffered
        + 2 * 2 * ci * _round_up(co, 8)       # w block, double-buffered
        + 2 * 2 * batch * _round_up(co, 8)    # out block, double-buffered
        + 4 * batch * _round_up(co, 8)        # accumulators / product temps
    )
    # ~3/8 of physical VMEM for the working set: ~24 MiB on v7x (64 MiB/TC),
    # ~48 MiB on v5e/v6e (128 MiB).
    budget = (_vmem_capacity_bytes() * 3) // 8
    blk = max(128, (budget // max(per_mode, 1)) // 128 * 128)
    blk = min(blk, 4096)
    blk = min(blk, _round_up(max(modes, 1), 128))   # never larger than the problem
    return int(blk)


def spectral_mix_pallas(x_pk, w_pk, m_blk):
    """out[b, o, m] = sum_i (xr + i*xi)[b, i, m] * (wr + i*wi)[i, o, m].

    x_pk : (2, B, Ci, M) f32,  w_pk : (2, Ci, Co, M) f32,  M % m_blk == 0.
    Returns (2, B, Co, M) f32 (real / imag planes).
    """
    _, B, Ci, M = x_pk.shape
    Co = w_pk.shape[2]
    num_m = M // m_blk

    vmem_limit = min((_vmem_capacity_bytes() * 3) // 4, 96 * 1024 * 1024)

    cost = pl.CostEstimate(
        flops=8 * M * B * Ci * Co,
        transcendentals=0,
        bytes_accessed=4 * (2 * M * B * Ci + 2 * M * Ci * Co + 2 * M * B * Co),
    )

    return pl.pallas_call(
        _spectral_mix_kernel,
        out_shape=jax.ShapeDtypeStruct((2, B, Co, M), jnp.float32),
        grid_spec=pltpu.PrefetchScalarGridSpec(
            num_scalar_prefetch=0,
            grid=(num_m,),
            in_specs=[
                pl.BlockSpec((2, B, Ci, m_blk), lambda m: (0, 0, 0, m)),
                pl.BlockSpec((2, Ci, Co, m_blk), lambda m: (0, 0, 0, m)),
            ],
            out_specs=pl.BlockSpec((2, B, Co, m_blk), lambda m: (0, 0, 0, m)),
        ),
        compiler_params=pltpu.CompilerParams(
            dimension_semantics=("parallel",),   # v7x: mode blocks over 2 TCs
            vmem_limit_bytes=vmem_limit,
        ),
        cost_estimate=cost,
    )(x_pk, w_pk)


def spectral_conv1d_uno(x, w_real, w_imag, dim1, modes1, *, use_pallas=None):
    """
    x       : (B, in_codim, input_dim1) float32
    w_real  : (in_codim, out_codim, modes1) float32   (real part of weights1)
    w_imag  : (in_codim, out_codim, modes1) float32   (imag part of weights1)
    returns : (B, out_codim, dim1) float32
    """
    B, Ci, N = x.shape
    Co = w_real.shape[1]
    m_full = dim1 // 2 + 1
    # Module contract: modes1 <= min(dim1 // 2, input_dim1 // 2).
    assert modes1 <= m_full and modes1 <= N // 2 + 1

    # TODO(synk): FFT/IFFT have no Pallas TPU primitive; done in plain JAX.
    x_ft = jnp.fft.rfft(x, norm="forward")[:, :, :modes1]        # (B, Ci, M1) c64
    xr = jnp.real(x_ft).astype(jnp.float32)
    xi = jnp.imag(x_ft).astype(jnp.float32)
    wr = w_real.astype(jnp.float32)
    wi = w_imag.astype(jnp.float32)

    if use_pallas is None:
        # Small-problem fallback: pallas_call fixed cost dominates tiny configs.
        use_pallas = (modes1 * B * Ci * Co) >= 65536

    if use_pallas:
        m_blk = _pick_mode_block(B, Ci, Co, modes1)
        m_pad = pl.cdiv(modes1, m_blk) * m_blk
        pad_m = ((0, 0), (0, 0), (0, 0), (0, m_pad - modes1))
        # rfft already puts modes last -> no transposes, just stack + pad.
        x_pk = jnp.pad(jnp.stack([xr, xi], axis=0), pad_m)       # (2, B, Ci, m_pad)
        w_pk = jnp.pad(jnp.stack([wr, wi], axis=0), pad_m)       # (2, Ci, Co, m_pad)
        out_pk = spectral_mix_pallas(x_pk, w_pk, m_blk)          # (2, B, Co, m_pad)
        out_re = out_pk[0, :, :, :modes1]
        out_im = out_pk[1, :, :, :modes1]
    else:
        out_re = jnp.einsum("bim,iom->bom", xr, wr) - jnp.einsum("bim,iom->bom", xi, wi)
        out_im = jnp.einsum("bim,iom->bom", xr, wi) + jnp.einsum("bim,iom->bom", xi, wr)

    out_ft = lax.complex(out_re, out_im)                         # (B, Co, modes1)
    # Zero tail out_ft[:, :, modes1:] -> one cheap pad, no in-kernel zero work.
    out_ft = jnp.pad(out_ft, ((0, 0), (0, 0), (0, m_full - modes1)))
    return jnp.fft.irfft(out_ft, n=dim1, norm="forward")


def reference_jax(x, w_real, w_imag, dim1, modes1):
    """Pure-JAX replica of the PyTorch forward (for sanity checking)."""
    B = x.shape[0]
    Co = w_real.shape[1]
    w = w_real.astype(jnp.complex64) + 1j * w_imag.astype(jnp.complex64)
    x_ft = jnp.fft.rfft(x, norm="forward")
    mixed = jnp.einsum(
        "bix,iox->box", x_ft[:, :, :modes1], w, precision=lax.Precision.HIGHEST
    )
    out_ft = jnp.zeros((B, Co, dim1 // 2 + 1), dtype=jnp.complex64)
    out_ft = out_ft.at[:, :, :modes1].set(mixed)
    return jnp.fft.irfft(out_ft, n=dim1, norm="forward")


if __name__ == "__main__":
    # Module config (small, consistent with the PyTorch module):
    in_codim, out_codim = 4, 4
    input_dim1 = 16          # input grid size
    dim1 = 16                # output grid size
    modes1 = dim1 // 2       # default modes1 = dim1 // 2 = 8
    batch = 2

    key = jax.random.PRNGKey(0)
    kx, kwr, kwi = jax.random.split(key, 3)

    # Input x: (batch, in_codim, input_dim1)
    x = jax.random.normal(kx, (batch, in_codim, input_dim1), dtype=jnp.float32)

    # Deterministic parameter init mirroring:
    #   scale * torch.randn(in_codim, out_codim, modes1, dtype=cfloat)
    scale = (1.0 / (2 * in_codim)) ** 0.5
    w_real = scale * jax.random.normal(kwr, (in_codim, out_codim, modes1), dtype=jnp.float32)
    w_imag = scale * jax.random.normal(kwi, (in_codim, out_codim, modes1), dtype=jnp.float32)

    # Force the Pallas path so the kernel is exercised even at demo scale
    # (the auto heuristic would pick the XLA fallback for a problem this small).
    out = spectral_conv1d_uno(x, w_real, w_imag, dim1, modes1, use_pallas=True)
    out = jax.block_until_ready(out)

    # Sanity check against pure-JAX reference of the PyTorch semantics.
    ref = jax.block_until_ready(reference_jax(x, w_real, w_imag, dim1, modes1))
    assert out.shape == (batch, out_codim, dim1), out.shape
    assert jnp.allclose(out, ref, atol=1e-4, rtol=1e-4), float(
        jnp.max(jnp.abs(out - ref))
    )

    print("KERNEL_OK")
</pallas_src>

<mosaic_0001>
module attributes {stable_mosaic.version = 11 : i64} {
  func.func @_spectral_mix_kernel(%arg0: i32, %arg1: memref<2x2x4x128xf32, #tpu.memory_space<vmem>>, %arg2: memref<2x4x4x128xf32, #tpu.memory_space<vmem>>, %arg3: memref<2x2x4x128xf32, #tpu.memory_space<vmem>>) attributes {dimension_semantics = [#tpu.dimension_semantics<parallel>], iteration_bounds = array<i64: 1>, scalar_prefetch = 0 : i64, scratch_operands = 0 : i64, tpu.core_type = #tpu.core_type<tc>, window_params = [{transform_indices = @transform_0, window_bounds = array<i64: 2, 2, 4, 128>}, {transform_indices = @transform_1, window_bounds = array<i64: 2, 4, 4, 128>}, {transform_indices = @transform_2, window_bounds = array<i64: 2, 2, 4, 128>}]} {
    %c0 = arith.constant 0 : index
    %c0_0 = arith.constant 0 : index
    %c0_1 = arith.constant 0 : index
    %c0_2 = arith.constant 0 : index
    %0 = vector.load %arg1[%c0, %c0_0, %c0_1, %c0_2] : memref<2x2x4x128xf32, #tpu.memory_space<vmem>>, vector<1x2x4x128xf32>
    %1 = vector.shape_cast %0 : vector<1x2x4x128xf32> to vector<2x4x128xf32>
    %c1 = arith.constant 1 : index
    %c0_3 = arith.constant 0 : index
    %c0_4 = arith.constant 0 : index
    %c0_5 = arith.constant 0 : index
    %2 = vector.load %arg1[%c1, %c0_3, %c0_4, %c0_5] : memref<2x2x4x128xf32, #tpu.memory_space<vmem>>, vector<1x2x4x128xf32>
    %3 = vector.shape_cast %2 : vector<1x2x4x128xf32> to vector<2x4x128xf32>
    %c0_6 = arith.constant 0 : index
    %c0_7 = arith.constant 0 : index
    %c0_8 = arith.constant 0 : index
    %c0_9 = arith.constant 0 : index
    %4 = vector.load %arg2[%c0_6, %c0_7, %c0_8, %c0_9] : memref<2x4x4x128xf32, #tpu.memory_space<vmem>>, vector<1x4x4x128xf32>
    %5 = vector.shape_cast %4 : vector<1x4x4x128xf32> to vector<4x4x128xf32>
    %c1_10 = arith.constant 1 : index
    %c0_11 = arith.constant 0 : index
    %c0_12 = arith.constant 0 : index
    %c0_13 = arith.constant 0 : index
    %6 = vector.load %arg2[%c1_10, %c0_11, %c0_12, %c0_13] : memref<2x4x4x128xf32, #tpu.memory_space<vmem>>, vector<1x4x4x128xf32>
    %7 = vector.shape_cast %6 : vector<1x4x4x128xf32> to vector<4x4x128xf32>
    %cst = arith.constant 0.000000e+00 : f32
    %8 = vector.broadcast %cst : f32 to vector<2x4x128xf32>
    %cst_14 = arith.constant 0.000000e+00 : f32
    %9 = vector.broadcast %cst_14 : f32 to vector<2x4x128xf32>
    %10 = vector.extract_strided_slice %1 {offsets = [0, 0, 0], sizes = [2, 1, 128], strides = [1, 1, 1]} : vector<2x4x128xf32> to vector<2x1x128xf32>
    %11 = vector.shape_cast %10 : vector<2x1x128xf32> to vector<2x128xf32>
    %12 = vector.shape_cast %11 : vector<2x128xf32> to vector<2x1x128xf32>
    %13 = vector.extract_strided_slice %3 {offsets = [0, 0, 0], sizes = [2, 1, 128], strides = [1, 1, 1]} : vector<2x4x128xf32> to vector<2x1x128xf32>
    %14 = vector.shape_cast %13 : vector<2x1x128xf32> to vector<2x128xf32>
    %15 = vector.shape_cast %14 : vector<2x128xf32> to vector<2x1x128xf32>
    %16 = vector.extract_strided_slice %5 {offsets = [0, 0, 0], sizes = [1, 4, 128], strides = [1, 1, 1]} : vector<4x4x128xf32> to vector<1x4x128xf32>
    %17 = vector.shape_cast %16 : vector<1x4x128xf32> to vector<4x128xf32>
    %18 = vector.shape_cast %17 : vector<4x128xf32> to vector<1x4x128xf32>
    %19 = vector.extract_strided_slice %7 {offsets = [0, 0, 0], sizes = [1, 4, 128], strides = [1, 1, 1]} : vector<4x4x128xf32> to vector<1x4x128xf32>
    %20 = vector.shape_cast %19 : vector<1x4x128xf32> to vector<4x128xf32>
    %21 = vector.shape_cast %20 : vector<4x128xf32> to vector<1x4x128xf32>
    %22 = vector.broadcast %12 : vector<2x1x128xf32> to vector<2x4x128xf32>
    %23 = vector.broadcast %18 : vector<1x4x128xf32> to vector<2x4x128xf32>
    %24 = arith.mulf %22, %23 : vector<2x4x128xf32>
    %25 = arith.addf %8, %24 : vector<2x4x128xf32>
    %26 = vector.broadcast %15 : vector<2x1x128xf32> to vector<2x4x128xf32>
    %27 = vector.broadcast %21 : vector<1x4x128xf32> to vector<2x4x128xf32>
    %28 = arith.mulf %26, %27 : vector<2x4x128xf32>
    %29 = arith.subf %25, %28 : vector<2x4x128xf32>
    %30 = vector.broadcast %12 : vector<2x1x128xf32> to vector<2x4x128xf32>
    %31 = vector.broadcast %21 : vector<1x4x128xf32> to vector<2x4x128xf32>
    %32 = arith.mulf %30, %31 : vector<2x4x128xf32>
    %33 = arith.addf %9, %32 : vector<2x4x128xf32>
    %34 = vector.broadcast %15 : vector<2x1x128xf32> to vector<2x4x128xf32>
    %35 = vector.broadcast %18 : vector<1x4x128xf32> to vector<2x4x128xf32>
    %36 = arith.mulf %34, %35 : vector<2x4x128xf32>
    %37 = arith.addf %33, %36 : vector<2x4x128xf32>
    %38 = vector.extract_strided_slice %1 {offsets = [0, 1, 0], sizes = [2, 1, 128], strides = [1, 1, 1]} : vector<2x4x128xf32> to vector<2x1x128xf32>
    %39 = vector.shape_cast %38 : vector<2x1x128xf32> to vector<2x128xf32>
    %40 = vector.shape_cast %39 : vector<2x128xf32> to vector<2x1x128xf32>
    %41 = vector.extract_strided_slice %3 {offsets = [0, 1, 0], sizes = [2, 1, 128], strides = [1, 1, 1]} : vector<2x4x128xf32> to vector<2x1x128xf32>
    %42 = vector.shape_cast %41 : vector<2x1x128xf32> to vector<2x128xf32>
    %43 = vector.shape_cast %42 : vector<2x128xf32> to vector<2x1x128xf32>
    %44 = vector.extract_strided_slice %5 {offsets = [1, 0, 0], sizes = [1, 4, 128], strides = [1, 1, 1]} : vector<4x4x128xf32> to vector<1x4x128xf32>
    %45 = vector.shape_cast %44 : vector<1x4x128xf32> to vector<4x128xf32>
    %46 = vector.shape_cast %45 : vector<4x128xf32> to vector<1x4x128xf32>
    %47 = vector.extract_strided_slice %7 {offsets = [1, 0, 0], sizes = [1, 4, 128], strides = [1, 1, 1]} : vector<4x4x128xf32> to vector<1x4x128xf32>
    %48 = vector.shape_cast %47 : vector<1x4x128xf32> to vector<4x128xf32>
    %49 = vector.shape_cast %48 : vector<4x128xf32> to vector<1x4x128xf32>
    %50 = vector.broadcast %40 : vector<2x1x128xf32> to vector<2x4x128xf32>
    %51 = vector.broadcast %46 : vector<1x4x128xf32> to vector<2x4x128xf32>
    %52 = arith.mulf %50, %51 : vector<2x4x128xf32>
    %53 = arith.addf %29, %52 : vector<2x4x128xf32>
    %54 = vector.broadcast %43 : vector<2x1x128xf32> to vector<2x4x128xf32>
    %55 = vector.broadcast %49 : vector<1x4x128xf32> to vector<2x4x128xf32>
    %56 = arith.mulf %54, %55 : vector<2x4x128xf32>
    %57 = arith.subf %53, %56 : vector<2x4x128xf32>
    %58 = vector.broadcast %40 : vector<2x1x128xf32> to vector<2x4x128xf32>
    %59 = vector.broadcast %49 : vector<1x4x128xf32> to vector<2x4x128xf32>
    %60 = arith.mulf %58, %59 : vector<2x4x128xf32>
    %61 = arith.addf %37, %60 : vector<2x4x128xf32>
    %62 = vector.broadcast %43 : vector<2x1x128xf32> to vector<2x4x128xf32>
    %63 = vector.broadcast %46 : vector<1x4x128xf32> to vector<2x4x128xf32>
    %64 = arith.mulf %62, %63 : vector<2x4x128xf32>
    %65 = arith.addf %61, %64 : vector<2x4x128xf32>
    %66 = vector.extract_strided_slice %1 {offsets = [0, 2, 0], sizes = [2, 1, 128], strides = [1, 1, 1]} : vector<2x4x128xf32> to vector<2x1x128xf32>
    %67 = vector.shape_cast %66 : vector<2x1x128xf32> to vector<2x128xf32>
    %68 = vector.shape_cast %67 : vector<2x128xf32> to vector<2x1x128xf32>
    %69 = vector.extract_strided_slice %3 {offsets = [0, 2, 0], sizes = [2, 1, 128], strides = [1, 1, 1]} : vector<2x4x128xf32> to vector<2x1x128xf32>
    %70 = vector.shape_cast %69 : vector<2x1x128xf32> to vector<2x128xf32>
    %71 = vector.shape_cast %70 : vector<2x128xf32> to vector<2x1x128xf32>
    %72 = vector.extract_strided_slice %5 {offsets = [2, 0, 0], sizes = [1, 4, 128], strides = [1, 1, 1]} : vector<4x4x128xf32> to vector<1x4x128xf32>
    %73 = vector.shape_cast %72 : vector<1x4x128xf32> to vector<4x128xf32>
    %74 = vector.shape_cast %73 : vector<4x128xf32> to vector<1x4x128xf32>
    %75 = vector.extract_strided_slice %7 {offsets = [2, 0, 0], sizes = [1, 4, 128], strides = [1, 1, 1]} : vector<4x4x128xf32> to vector<1x4x128xf32>
    %76 = vector.shape_cast %75 : vector<1x4x128xf32> to vector<4x128xf32>
    %77 = vector.shape_cast %76 : vector<4x128xf32> to vector<1x4x128xf32>
    %78 = vector.broadcast %68 : vector<2x1x128xf32> to vector<2x4x128xf32>
    %79 = vector.broadcast %74 : vector<1x4x128xf32> to vector<2x4x128xf32>
    %80 = arith.mulf %78, %79 : vector<2x4x128xf32>
    %81 = arith.addf %57, %80 : vector<2x4x128xf32>
    %82 = vector.broadcast %71 : vector<2x1x128xf32> to vector<2x4x128xf32>
    %83 = vector.broadcast %77 : vector<1x4x128xf32> to vector<2x4x128xf32>
    %84 = arith.mulf %82, %83 : vector<2x4x128xf32>
    %85 = arith.subf %81, %84 : vector<2x4x128xf32>
    %86 = vector.broadcast %68 : vector<2x1x128xf32> to vector<2x4x128xf32>
    %87 = vector.broadcast %77 : vector<1x4x128xf32> to vector<2x4x128xf32>
    %88 = arith.mulf %86, %87 : vector<2x4x128xf32>
    %89 = arith.addf %65, %88 : vector<2x4x128xf32>
    %90 = vector.broadcast %71 : vector<2x1x128xf32> to vector<2x4x128xf32>
    %91 = vector.broadcast %74 : vector<1x4x128xf32> to vector<2x4x128xf32>
    %92 = arith.mulf %90, %91 : vector<2x4x128xf32>
    %93 = arith.addf %89, %92 : vector<2x4x128xf32>
    %94 = vector.extract_strided_slice %1 {offsets = [0, 3, 0], sizes = [2, 1, 128], strides = [1, 1, 1]} : vector<2x4x128xf32> to vector<2x1x128xf32>
    %95 = vector.shape_cast %94 : vector<2x1x128xf32> to vector<2x128xf32>
    %96 = vector.shape_cast %95 : vector<2x128xf32> to vector<2x1x128xf32>
    %97 = vector.extract_strided_slice %3 {offsets = [0, 3, 0], sizes = [2, 1, 128], strides = [1, 1, 1]} : vector<2x4x128xf32> to vector<2x1x128xf32>
    %98 = vector.shape_cast %97 : vector<2x1x128xf32> to vector<2x128xf32>
    %99 = vector.shape_cast %98 : vector<2x128xf32> to vector<2x1x128xf32>
    %100 = vector.extract_strided_slice %5 {offsets = [3, 0, 0], sizes = [1, 4, 128], strides = [1, 1, 1]} : vector<4x4x128xf32> to vector<1x4x128xf32>
    %101 = vector.shape_cast %100 : vector<1x4x128xf32> to vector<4x128xf32>
    %102 = vector.shape_cast %101 : vector<4x128xf32> to vector<1x4x128xf32>
    %103 = vector.extract_strided_slice %7 {offsets = [3, 0, 0], sizes = [1, 4, 128], strides = [1, 1, 1]} : vector<4x4x128xf32> to vector<1x4x128xf32>
    %104 = vector.shape_cast %103 : vector<1x4x128xf32> to vector<4x128xf32>
    %105 = vector.shape_cast %104 : vector<4x128xf32> to vector<1x4x128xf32>
    %106 = vector.broadcast %96 : vector<2x1x128xf32> to vector<2x4x128xf32>
    %107 = vector.broadcast %102 : vector<1x4x128xf32> to vector<2x4x128xf32>
    %108 = arith.mulf %106, %107 : vector<2x4x128xf32>
    %109 = arith.addf %85, %108 : vector<2x4x128xf32>
    %110 = vector.broadcast %99 : vector<2x1x128xf32> to vector<2x4x128xf32>
    %111 = vector.broadcast %105 : vector<1x4x128xf32> to vector<2x4x128xf32>
    %112 = arith.mulf %110, %111 : vector<2x4x128xf32>
    %113 = arith.subf %109, %112 : vector<2x4x128xf32>
    %114 = vector.broadcast %96 : vector<2x1x128xf32> to vector<2x4x128xf32>
    %115 = vector.broadcast %105 : vector<1x4x128xf32> to vector<2x4x128xf32>
    %116 = arith.mulf %114, %115 : vector<2x4x128xf32>
    %117 = arith.addf %93, %116 : vector<2x4x128xf32>
    %118 = vector.broadcast %99 : vector<2x1x128xf32> to vector<2x4x128xf32>
    %119 = vector.broadcast %102 : vector<1x4x128xf32> to vector<2x4x128xf32>
    %120 = arith.mulf %118, %119 : vector<2x4x128xf32>
    %121 = arith.addf %117, %120 : vector<2x4x128xf32>
    %c0_15 = arith.constant 0 : index
    %c0_16 = arith.constant 0 : index
    %c0_17 = arith.constant 0 : index
    %c0_18 = arith.constant 0 : index
    %122 = vector.load %arg3[%c0_15, %c0_16, %c0_17, %c0_18] : memref<2x2x4x128xf32, #tpu.memory_space<vmem>>, vector<1x2x4x128xf32>
    %123 = vector.shape_cast %122 : vector<1x2x4x128xf32> to vector<2x4x128xf32>
    %124 = vector.shape_cast %113 : vector<2x4x128xf32> to vector<1x2x4x128xf32>
    tpu.vector_store %arg3[%c0_15, %c0_16, %c0_17, %c0_18], %124 {strides = array<i32>} : memref<2x2x4x128xf32, #tpu.memory_space<vmem>>, vector<1x2x4x128xf32>,
    %c1_19 = arith.constant 1 : index
    %c0_20 = arith.constant 0 : index
    %c0_21 = arith.constant 0 : index
    %c0_22 = arith.constant 0 : index
    %125 = vector.load %arg3[%c1_19, %c0_20, %c0_21, %c0_22] : memref<2x2x4x128xf32, #tpu.memory_space<vmem>>, vector<1x2x4x128xf32>
    %126 = vector.shape_cast %125 : vector<1x2x4x128xf32> to vector<2x4x128xf32>
    %127 = vector.shape_cast %121 : vector<2x4x128xf32> to vector<1x2x4x128xf32>
    tpu.vector_store %arg3[%c1_19, %c0_20, %c0_21, %c0_22], %127 {strides = array<i32>} : memref<2x2x4x128xf32, #tpu.memory_space<vmem>>, vector<1x2x4x128xf32>,
    return
  }
  func.func @transform_0(%arg0: i32) -> (i32, i32, i32, i32) {
    %c0_i32 = arith.constant 0 : i32
    %c0_i32_0 = arith.constant 0 : i32
    %c0_i32_1 = arith.constant 0 : i32
    %c0_i32_2 = arith.constant 0 : i32
    return %c0_i32, %c0_i32_0, %c0_i32_1, %arg0 : i32, i32, i32, i32
  }
  func.func @transform_1(%arg0: i32) -> (i32, i32, i32, i32) {
    %c0_i32 = arith.constant 0 : i32
    %c0_i32_0 = arith.constant 0 : i32
    %c0_i32_1 = arith.constant 0 : i32
    %c0_i32_2 = arith.constant 0 : i32
    return %c0_i32, %c0_i32_0, %c0_i32_1, %arg0 : i32, i32, i32, i32
  }
  func.func @transform_2(%arg0: i32) -> (i32, i32, i32, i32) {
    %c0_i32 = arith.constant 0 : i32
    %c0_i32_0 = arith.constant 0 : i32
    %c0_i32_1 = arith.constant 0 : i32
    %c0_i32_2 = arith.constant 0 : i32
    return %c0_i32, %c0_i32_0, %c0_i32_1, %arg0 : i32, i32, i32, i32
  }
}

</mosaic_0001>

<bundles_post_ra>
// kernel: tpu_custom_call.1
= control target key start
LH: loop header
LB: loop body
LE: loop exit
PB: predicated region body
PF: predicated region fallthrough
CT: control target
= control target key end

     0   :  { %7 = vsyncpa [#allocation3], 0  ;;  %s320_s0 = inlined_call_operand.hbm [shape: f32[2,2,4,128], index: 0, kind: input, shape index: {}]   ;;  %s321_s1 = inlined_call_operand.hbm [shape: f32[2,4,4,128], index: 1, kind: input, shape index: {}]   ;;  %s322_s2 = inlined_call_operand.hbm [shape: f32[2,2,4,128], index: 2, kind: output, shape index: {}]  }
   0x1   :  { %8 = vsyncpa [#allocation6], 0 }
   0x2   :  { %9 = vsyncpa [#allocation4], 0  ;;  %s14_s11 = sshll.u32 %s320_s0, 4  ;;  %s246_s12 = smov [#allocation2]   ;;  %s15_s11 = int_to_ptr.hbm [resolvable:$true] %s14_s11 }
   0x3   :  { %s16_s13 = sshll.u32 %s246_s12, 4  ;;  %s27_s16 = sshll.u32 %s321_s1, 4  ;;  %s17_s13 = int_to_ptr.vmem [resolvable:$true] %s16_s13  ;;  %s28_s16 = int_to_ptr.hbm [resolvable:$true] %s27_s16 }
   0x4   :  { %s247_s17 = smov 64   ;;  %s248_s18 = smov 4  }
   0x5   :  { %22 = dma.hbm_to_vmem [thread:$0]  %s15_s11, 256, %s17_s13, [#allocation3], %s247_s17, %s247_s17, %s248_s18  }
   0x6   :  { %s249_s19 = smov [#allocation5]  }
   0x7   :  { %s29_s20 = sshll.u32 %s249_s19, 4  ;;  %s30_s20 = int_to_ptr.vmem [resolvable:$true] %s29_s20 }
   0x8   :  { %35 = dma.hbm_to_vmem [thread:$0]  %s28_s16, 512, %s30_s20, [#allocation6], %s247_s17, %s247_s17, %s248_s18  }
   0x9   :  { %240 = dma.done.wait [#allocation3], 256  }
   0xa   :  { %241 = vsyncadd [#allocation3], 4294967040 }
   0xb   :  { %242 = dma.done.wait [#allocation6], 512  }
   0xc   :  { %243 = vsyncadd [#allocation6], 4294966784  ;;  %v278_v0 = vld [vmem:[#allocation2] sm:$0xf]  ;;  %v280_v1 = vld [vmem:[#allocation2 + $0x8] sm:$0xf] }
   0xd   :  { %v49_v2 = vld [vmem:[#allocation5] sm:$0xf]  ;;  %v50_v3 = vld [vmem:[#allocation5 + $0x4] sm:$0xf]  ;;  %v54_v4 = vld [vmem:[#allocation5 + $0x10] sm:$0xf] }
   0xe   :  { %v58_v5 = vperm.slane %v278_v0, 0  ;;  %v64_v6 = vperm.slane %v280_v1, 0  ;;  %v78_v7 = vperm.slane %v278_v0, 1  ;;  %v84_v8 = vperm.slane %v280_v1, 1  ;;  %v287_v10 = vld [vmem:[#allocation2 + $0x4] sm:$0xf] }
   0xf   :  { %v98_v9 = vperm.slane %v278_v0, 2  ;;  %v289_v11 = vld [vmem:[#allocation5 + $0x8] sm:$0xf]  ;;  %v55_v12 = vld [vmem:[#allocation5 + $0x14] sm:$0xf]  ;;  %v104_v18 = vperm.slane %v280_v1, 2 }
  0x10   :  { %v60_v13 = vmul.f32 %v58_v5, %v49_v2  ;;  %v66_v14 = vmul.f32 %v64_v6, %v54_v4  ;;  %v80_v15 = vmul.f32 %v78_v7, %v50_v3  ;;  %v291_v16 = vld [vmem:[#allocation2 + $0xc] sm:$0xf]  ;;  %v86_v17 = vmul.f32 %v84_v8, %v55_v12  ;;  %v296_v21 = vld [vmem:[#allocation5 + $0xc] sm:$0xf]  ;;  %v56_v30 = vld [vmem:[#allocation5 + $0x18] sm:$0xf] }
  0x11   :  { %v118_v19 = vperm.slane %v278_v0, 3  ;;  %v124_v20 = vperm.slane %v280_v1, 3  ;;  %v59_v23 = vperm.slane %v287_v10, 0  ;;  %v65_v24 = vperm.slane %v291_v16, 0  ;;  %v57_v37 = vld [vmem:[#allocation5 + $0x1c] sm:$0xf] }
  0x12   :  { %v68_v22 = vsub.f32 %v60_v13, %v66_v14  ;;  %v79_v25 = vperm.slane %v287_v10, 1  ;;  %v100_v26 = vmul.f32 %v98_v9, %v289_v11  ;;  %v85_v27 = vperm.slane %v291_v16, 1  ;;  %s250_s0 = smov [#allocation7]   ;;  %s149_s23 = sshll.u32 %s322_s2, 4  ;;  %s150_s23 = int_to_ptr.hbm [resolvable:$true] %s149_s23 }
  0x13   :  { %v99_v28 = vperm.slane %v287_v10, 2  ;;  %v105_v29 = vperm.slane %v291_v16, 2  ;;  %v61_v32 = vmul.f32 %v59_v23, %v49_v2  ;;  %v67_v33 = vmul.f32 %v65_v24, %v54_v4  ;;  %s147_s1 = sshll.u32 %s250_s0, 4  ;;  %s148_s1 = int_to_ptr.vmem [resolvable:$true] %s147_s1 }
  0x14   :  { %v82_v31 = vadd.f32 %v80_v15, %v68_v22  ;;  %v81_v34 = vmul.f32 %v79_v25, %v50_v3  ;;  %v106_v35 = vmul.f32 %v104_v18, %v56_v30  ;;  %v120_v36 = vmul.f32 %v118_v19, %v296_v21 }
  0x15   :  { %v69_v39 = vsub.f32 %v61_v32, %v67_v33  ;;  %v87_v40 = vmul.f32 %v85_v27, %v55_v12  ;;  %v70_v41 = vmul.f32 %v58_v5, %v54_v4  ;;  %v126_v42 = vmul.f32 %v124_v20, %v57_v37 }
  0x16   :  { %v88_v38 = vsub.f32 %v82_v31, %v86_v17  ;;  %v119_v43 = vperm.slane %v287_v10, 3  ;;  %v74_v44 = vmul.f32 %v64_v6, %v49_v2  ;;  %v90_v45 = vmul.f32 %v78_v7, %v55_v12 }
  0x17   :  { %v83_v47 = vadd.f32 %v81_v34, %v69_v39  ;;  %v101_v48 = vmul.f32 %v99_v28, %v289_v11  ;;  %v107_v49 = vmul.f32 %v105_v29, %v56_v30  ;;  %v125_v50 = vperm.slane %v291_v16, 3 }
  0x18   :  { %v102_v46 = vadd.f32 %v100_v26, %v88_v38  ;;  %v76_v51 = vadd.f32 %v74_v44, %v70_v41  ;;  %v94_v52 = vmul.f32 %v84_v8, %v50_v3  ;;  %v71_v53 = vmul.f32 %v59_v23, %v54_v4 }
  0x19   :  { %v89_v55 = vsub.f32 %v83_v47, %v87_v40  ;;  %v75_v56 = vmul.f32 %v65_v24, %v49_v2  ;;  %v91_v57 = vmul.f32 %v79_v25, %v55_v12  ;;  %v121_v58 = vmul.f32 %v119_v43, %v296_v21 }
  0x1a   :  { %v108_v54 = vsub.f32 %v102_v46, %v106_v35  ;;  %v92_v59 = vadd.f32 %v90_v45, %v76_v51  ;;  %v110_v60 = vmul.f32 %v98_v9, %v56_v30  ;;  %v95_v0 = vmul.f32 %v85_v27, %v50_v3 }
  0x1b   :  { %v103_v62 = vadd.f32 %v101_v48, %v89_v55  ;;  %v77_v63 = vadd.f32 %v75_v56, %v71_v53  ;;  %v127_v1 = vmul.f32 %v125_v50, %v57_v37  ;;  %v114_v6 = vmul.f32 %v104_v18, %v289_v11 }
  0x1c   :  { %v122_v61 = vadd.f32 %v120_v36, %v108_v54  ;;  %v96_v5 = vadd.f32 %v94_v52, %v92_v59  ;;  %v111_v4 = vmul.f32 %v99_v28, %v56_v30  ;;  %v130_v14 = vmul.f32 %v118_v19, %v57_v37 }
  0x1d   :  { %v109_v10 = vsub.f32 %v103_v62, %v107_v49  ;;  %v93_v8 = vadd.f32 %v91_v57, %v77_v63  ;;  %v115_v15 = vmul.f32 %v105_v29, %v289_v11  ;;  %v134_v16 = vmul.f32 %v124_v20, %v296_v21 }
  0x1e   :  { %v128_v7 = vsub.f32 %v122_v61, %v126_v42  ;;  %v112_v13 = vadd.f32 %v110_v60, %v96_v5  ;;  %v131_v22 = vmul.f32 %v119_v43, %v57_v37  ;;  %v135_v24 = vmul.f32 %v125_v50, %v296_v21 }
  0x1f   :  { %v123_v2 = vadd.f32 %v121_v58, %v109_v10  ;;  %v97_v12 = vadd.f32 %v95_v0, %v93_v8 }
  0x20   :  { %138 = vst [vmem:[#allocation7] sm:$0xf] %v128_v7  ;;  %v116_v9 = vadd.f32 %v114_v6, %v112_v13 }
  0x21   :  { %v129_v17 = vsub.f32 %v123_v2, %v127_v1  ;;  %v113_v3 = vadd.f32 %v111_v4, %v97_v12 }
  0x22   :  { %v132_v23 = vadd.f32 %v130_v14, %v116_v9 }
  0x23   :  { %139 = vst [vmem:[#allocation7 + $0x4] sm:$0xf] %v129_v17  ;;  %v117_v18 = vadd.f32 %v115_v15, %v113_v3 }
  0x24   :  { %v136_v25 = vadd.f32 %v134_v16, %v132_v23 }
  0x25   :  { %v133_v19 = vadd.f32 %v131_v22, %v117_v18 }
  0x26   :  { %141 = vst [vmem:[#allocation7 + $0x8] sm:$0xf] %v136_v25 }
  0x27   :  { %v137_v11 = vadd.f32 %v135_v24, %v133_v19 }
  0x29   :  { %142 = vst [vmem:[#allocation7 + $0xc] sm:$0xf] %v137_v11 }
  0x2a   :  { %155 = dma.vmem_to_hbm [thread:$0]  %s148_s1, 256, %s150_s23, [#allocation4], %s247_s17, %s247_s17, %s248_s18  }
  0x2b   :  { %244 = dma.done.wait [#allocation4], 256  }
  0x2c   :  { %245 = vsyncadd [#allocation4], 4294967040 }
  0x2d   :  { %160 = vsyncpa [#allocation3], 1 }
  0x2e   :  { %161 = vsyncpa [#allocation6], 1 }
  0x2f   :  { %162 = vsyncpa [#allocation4], 1 }

</bundles_post_ra>
